<compile_context>
chip_gen: v7x
topology: tpu7x:2x2x1
jax: 0.10.0
libtpu: 0.0.40
codegen_flags: <defaults>
</compile_context>

<pallas_src>
import functools
import math

import numpy as np

import jax
import jax.numpy as jnp
from jax.experimental import pallas as pl
from jax.experimental.pallas import tpu as pltpu

K = 8


def _circular_encoding_kernel(x_ref, perm_ref, tmpl_ref, o_ref):
    # x_ref:    (TB, PACK*K)   packed input rows (lane-dense, 128 lanes)
    # perm_ref: (PACK*K, PACK*3K) constant one-hot lane-scatter matrix
    # tmpl_ref: (1, PACK*3K)   constant sin/cos template (zeros in x lanes)
    # o_ref:    (TB, PACK*3K)  packed output rows (lane-dense, 384 lanes)
    scattered = jnp.dot(
        x_ref[...].astype(jnp.float32),
        perm_ref[...],
        preferred_element_type=jnp.float32,
    )
    o_ref[...] = (scattered + tmpl_ref[...]).astype(o_ref.dtype)


@functools.partial(jax.jit, static_argnames=("block_rows",))
def circular_encoding(x, *, block_rows=512):
    """x: (B, K) -> (B, 3*K) = concat([x, sin(ang), cos(ang)], axis=1)."""
    b, k = x.shape
    out_dtype = x.dtype

    # Constant encodings (same math as the nn.Module buffers).
    ang = 2.0 * math.pi * np.arange(k, dtype=np.float32) / k
    sin_np, cos_np = np.sin(ang), np.cos(ang)

    # Pack PACK logical rows per physical row so blocks are lane-dense
    # (last dim a multiple of 128). For K=8: PACK=16 -> 128 in / 384 out.
    pack = 128 // k if (k <= 128 and 128 % k == 0) else 1

    # Pad the batch so the packed row count is a sublane (8) multiple and the
    # reshape is exact; padded rows are sliced off at the end.
    row_quantum = 8 * pack
    b_pad = ((b + row_quantum - 1) // row_quantum) * row_quantum
    if b_pad != b:
        x = jnp.pad(x, ((0, b_pad - b), (0, 0)))
    rows = b_pad // pack                         # packed row count
    in_lanes, out_lanes = pack * k, pack * 3 * k

    # Constant one-hot scatter matrix + sin/cos template, built once at trace
    # time (192 KiB + 1.5 KiB), DMA'd once (same block index every step).
    perm = np.zeros((in_lanes, out_lanes), dtype=np.float32)
    tmpl = np.zeros((1, out_lanes), dtype=np.float32)
    for g in range(pack):
        for j in range(k):
            perm[g * k + j, g * 3 * k + j] = 1.0
        tmpl[0, g * 3 * k + k:g * 3 * k + 2 * k] = sin_np
        tmpl[0, g * 3 * k + 2 * k:g * 3 * k + 3 * k] = cos_np

    x_packed = x.reshape(rows, in_lanes)         # free, row-major contiguous
    tb = min(block_rows, rows)                   # multiple of 8, or full dim
    grid = (pl.cdiv(rows, tb),)

    out_packed = pl.pallas_call(
        _circular_encoding_kernel,
        out_shape=jax.ShapeDtypeStruct((rows, out_lanes), out_dtype),
        grid=grid,
        in_specs=[
            pl.BlockSpec((tb, in_lanes), lambda i: (i, 0)),
            pl.BlockSpec((in_lanes, out_lanes), lambda i: (0, 0)),
            pl.BlockSpec((1, out_lanes), lambda i: (0, 0)),
        ],
        out_specs=pl.BlockSpec((tb, out_lanes), lambda i: (i, 0)),
        compiler_params=pltpu.CompilerParams(
            dimension_semantics=("parallel",),
        ),
        cost_estimate=pl.CostEstimate(
            flops=0,
            transcendentals=0,
            bytes_accessed=b_pad * 4 * (k + 3 * k),
        ),
    )(x_packed, jnp.asarray(perm), jnp.asarray(tmpl))

    out = out_packed.reshape(b_pad, 3 * k)       # free reshape back
    return out[:b] if b_pad != b else out


if __name__ == "__main__":
    key = jax.random.PRNGKey(0)
    angles = 2.0 * math.pi * jnp.arange(K, dtype=jnp.float32) / K
    sin_row = jnp.sin(angles)[None, :]
    cos_row = jnp.cos(angles)[None, :]

    # Main check: batch is a multiple of the 128-row packing quantum,
    # so the packed path runs with a single full-tile grid step.
    batch = 1024
    x = jax.random.normal(key, (batch, K), dtype=jnp.float32)
    out = jax.block_until_ready(circular_encoding(x))
    ref = jnp.concatenate(
        [x,
         jnp.broadcast_to(sin_row, (batch, K)),
         jnp.broadcast_to(cos_row, (batch, K))], axis=1)
    assert out.shape == (batch, 3 * K), out.shape
    assert jnp.allclose(out, ref, atol=1e-5), "mismatch vs reference (packed path)"

    # Ragged-batch check (exercises the pad + slice path flagged in review).
    batch2 = 10
    x2 = jax.random.normal(jax.random.PRNGKey(1), (batch2, K), dtype=jnp.float32)
    out2 = jax.block_until_ready(circular_encoding(x2))
    ref2 = jnp.concatenate(
        [x2,
         jnp.broadcast_to(sin_row, (batch2, K)),
         jnp.broadcast_to(cos_row, (batch2, K))], axis=1)
    assert out2.shape == (batch2, 3 * K), out2.shape
    assert jnp.allclose(out2, ref2, atol=1e-5), "mismatch vs reference (ragged path)"

    print("KERNEL_OK")
</pallas_src>

<mosaic_0001>
module attributes {stable_mosaic.version = 11 : i64} {
  func.func @_circular_encoding_kernel(%arg0: i32, %arg1: memref<64x128xf32, #tpu.memory_space<vmem>>, %arg2: memref<128x384xf32, #tpu.memory_space<vmem>>, %arg3: memref<1x384xf32, #tpu.memory_space<vmem>>, %arg4: memref<64x384xf32, #tpu.memory_space<vmem>>) attributes {dimension_semantics = [#tpu.dimension_semantics<parallel>], iteration_bounds = array<i64: 1>, scalar_prefetch = 0 : i64, scratch_operands = 0 : i64, tpu.core_type = #tpu.core_type<tc>, window_params = [{transform_indices = @transform_0, window_bounds = array<i64: 64, 128>}, {pipeline_mode = #tpu.pipeline_mode<synchronous>, transform_indices = @transform_1, window_bounds = array<i64: 128, 384>}, {pipeline_mode = #tpu.pipeline_mode<synchronous>, transform_indices = @transform_2, window_bounds = array<i64: 1, 384>}, {transform_indices = @transform_3, window_bounds = array<i64: 64, 384>}]} {
    %c0 = arith.constant 0 : index
    %c0_0 = arith.constant 0 : index
    %0 = vector.load %arg1[%c0, %c0_0] : memref<64x128xf32, #tpu.memory_space<vmem>>, vector<64x128xf32>
    %c0_1 = arith.constant 0 : index
    %c0_2 = arith.constant 0 : index
    %1 = vector.load %arg2[%c0_1, %c0_2] : memref<128x384xf32, #tpu.memory_space<vmem>>, vector<128x384xf32>
    %cst = arith.constant dense<0.000000e+00> : vector<64x384xf32>
    %2 = tpu.matmul %0, %1, %cst {dimension_numbers = #tpu.dot_dimension_numbers<[1], [0], [0], [1], [0, 0, 1, 1], [], []>} : vector<64x128xf32>, vector<128x384xf32>, vector<64x384xf32> -> vector<64x384xf32>
    %c0_3 = arith.constant 0 : index
    %c0_4 = arith.constant 0 : index
    %3 = vector.load %arg3[%c0_3, %c0_4] : memref<1x384xf32, #tpu.memory_space<vmem>>, vector<1x384xf32>
    %4 = vector.broadcast %3 : vector<1x384xf32> to vector<64x384xf32>
    %5 = arith.addf %2, %4 : vector<64x384xf32>
    %c0_5 = arith.constant 0 : index
    %c0_6 = arith.constant 0 : index
    %6 = vector.load %arg4[%c0_5, %c0_6] : memref<64x384xf32, #tpu.memory_space<vmem>>, vector<64x384xf32>
    tpu.vector_store %arg4[%c0_5, %c0_6], %5 {strides = array<i32>} : memref<64x384xf32, #tpu.memory_space<vmem>>, vector<64x384xf32>,
    return
  }
  func.func @transform_0(%arg0: i32) -> (i32, i32) {
    %c0_i32 = arith.constant 0 : i32
    %c0_i32_0 = arith.constant 0 : i32
    return %arg0, %c0_i32 : i32, i32
  }
  func.func @transform_1(%arg0: i32) -> (i32, i32) {
    %c0_i32 = arith.constant 0 : i32
    %c0_i32_0 = arith.constant 0 : i32
    %c0_i32_1 = arith.constant 0 : i32
    return %c0_i32, %c0_i32_0 : i32, i32
  }
  func.func @transform_2(%arg0: i32) -> (i32, i32) {
    %c0_i32 = arith.constant 0 : i32
    %c0_i32_0 = arith.constant 0 : i32
    %c0_i32_1 = arith.constant 0 : i32
    return %c0_i32, %c0_i32_0 : i32, i32
  }
  func.func @transform_3(%arg0: i32) -> (i32, i32) {
    %c0_i32 = arith.constant 0 : i32
    %c0_i32_0 = arith.constant 0 : i32
    return %arg0, %c0_i32 : i32, i32
  }
}

</mosaic_0001>

<bundles_post_ra>
// kernel: circular_encoding.1
= control target key start
LH: loop header
LB: loop body
LE: loop exit
PB: predicated region body
PF: predicated region fallthrough
CT: control target
= control target key end

     0   :  { %v466_v3 = vmov 0.0   ;;  %s758_s1 = inlined_call_operand.vmem [shape: f32[128,384], index: 1, kind: input, shape index: {}]   ;;  %s759_s0 = inlined_call_operand.vmem [shape: f32[64,128], index: 0, kind: input, shape index: {}]   ;;  %s760_s2 = inlined_call_operand.vmem [shape: f32[1,384], index: 2, kind: input, shape index: {}]   ;;  %s761_s3 = inlined_call_operand.vmem [shape: f32[64,384], index: 3, kind: output, shape index: {}]  }
   0x1   :  { %v23_v0 = vld [vmem:[%s758_s1 + $0x8] sm:$0xff]  ;;  %v26_v1 = vld [vmem:[%s758_s1 + $0x20] sm:$0xff]  ;;  %151 = vmatprep.mubr.f32.mxu0 %v466_v3  ;;  %v25_v5 = vld [vmem:[%s758_s1 + $0x18] sm:$0xff] }
   0x2   :  { %v22_v2 = vld [vmem:[%s758_s1] sm:$0xff]  ;;  %v401_v4 = vpack.c.bf16 %v26_v1, %v23_v0  ;;  %v29_v6 = vld [vmem:[%s758_s1 + $0x38] sm:$0xff]  ;;  %v32_v7 = vld [vmem:[%s758_s1 + $0x50] sm:$0xff] }
   0x3   :  { %v403_v8 = vpack.c.bf16 %v25_v5, %v22_v2  ;;  %v405_v9 = vpack.c.bf16 %v32_v7, %v29_v6  ;;  %v28_v10 = vld [vmem:[%s758_s1 + $0x30] sm:$0xff]  ;;  %v31_v11 = vld [vmem:[%s758_s1 + $0x48] sm:$0xff]  ;;  %v38_v13 = vld [vmem:[%s758_s1 + $0x80] sm:$0xff] }
   0x4   :  { %v35_v12 = vld [vmem:[%s758_s1 + $0x68] sm:$0xff]  ;;  %402 = vmatprep.subr.bf16.mxu0 %v401_v4  ;;  %v407_v14 = vpack.c.bf16 %v31_v11, %v28_v10  ;;  %v34_v15 = vld [vmem:[%s758_s1 + $0x60] sm:$0xff]  ;;  %v37_v17 = vld [vmem:[%s758_s1 + $0x78] sm:$0xff] }
   0x5   :  { %404 = vmatpush1.bf16.msra.mxu0 %v403_v8  ;;  %v409_v16 = vpack.c.bf16 %v38_v13, %v35_v12  ;;  %v24_v18 = vld [vmem:[%s758_s1 + $0x10] sm:$0xff]  ;;  %v27_v19 = vld [vmem:[%s758_s1 + $0x28] sm:$0xff]  ;;  %v41_v20 = vld [vmem:[%s758_s1 + $0x98] sm:$0xff]  ;;  %v411_v25 = vpack.c.bf16 %v37_v17, %v34_v15 }
   0x6   :  { %406 = vmatprep.subr.bf16.mxu0 %v405_v9  ;;  %v44_v21 = vld [vmem:[%s758_s1 + $0xb0] sm:$0xff]  ;;  %v433_v22 = vpack.c.bf16 %v27_v19, %v24_v18  ;;  %v30_v23 = vld [vmem:[%s758_s1 + $0x40] sm:$0xff]  ;;  %v33_v24 = vld [vmem:[%s758_s1 + $0x58] sm:$0xff]  ;;  %v72_v18 = vlaneseq }
   0x7   :  { %v40_v26 = vld [vmem:[%s758_s1 + $0x90] sm:$0xff]  ;;  %v437_v27 = vpack.c.bf16 %v33_v24, %v30_v23  ;;  %v413_v28 = vpack.c.bf16 %v44_v21, %v41_v20  ;;  %v43_v29 = vld [vmem:[%s758_s1 + $0xa8] sm:$0xff]  ;;  %v50_v33 = vld [vmem:[%s758_s1 + $0xe0] sm:$0xff] }
   0x8   :  { %434 = vmatprep.subr.bf16.mxu1 %v433_v22  ;;  %v36_v30 = vld [vmem:[%s758_s1 + $0x70] sm:$0xff]  ;;  %v39_v31 = vld [vmem:[%s758_s1 + $0x88] sm:$0xff]  ;;  %v42_v35 = vld [vmem:[%s758_s1 + $0xa0] sm:$0xff]  ;;  %v415_v37 = vpack.c.bf16 %v43_v29, %v40_v26  ;;  %v73_v19 = vshrl.u32 %v72_v18, 7 }
   0x9   :  { %408 = vmatpush1.bf16.msra.mxu0 %v407_v14  ;;  %436 = vmatpush3.bf16.msra.mxu1 %v433_v22  ;;  %v47_v32 = vld [vmem:[%s758_s1 + $0xc8] sm:$0xff]  ;;  %v441_v34 = vpack.c.bf16 %v39_v31, %v36_v30  ;;  %v45_v36 = vld [vmem:[%s758_s1 + $0xb8] sm:$0xff]  ;;  %v46_v39 = vld [vmem:[%s758_s1 + $0xc0] sm:$0xff] }
   0xa   :  { %410 = vmatprep.subr.bf16.mxu0 %v409_v16  ;;  %438 = vmatprep.subr.bf16.mxu1 %v437_v27  ;;  %v417_v38 = vpack.c.bf16 %v50_v33, %v47_v32  ;;  %v49_v40 = vld [vmem:[%s758_s1 + $0xd8] sm:$0xff]  ;;  %v56_v42 = vld [vmem:[%s758_s1 + $0x110] sm:$0xff]  ;;  %v445_v43 = vpack.c.bf16 %v45_v36, %v42_v35  ;;  %v14_v44 = vld [vmem:[%s759_s0] sm:$0xff]  ;;  %v74_v20 = vsub.s32 0, %v73_v19  ;;  %v78_v22 = vsub.s32 1, %v73_v19 }
   0xb   :  { %v53_v41 = vld [vmem:[%s758_s1 + $0xf8] sm:$0xff]  ;;  %v48_v45 = vld [vmem:[%s758_s1 + $0xd0] sm:$0xff]  ;;  %v51_v46 = vld [vmem:[%s758_s1 + $0xe8] sm:$0xff]  ;;  %389 = vmatprep.mubr.f32.mxu1 %v14_v44  ;;  %v419_v47 = vpack.c.bf16 %v49_v40, %v46_v39 }
   0xc   :  { %v421_v48 = vpack.c.bf16 %v56_v42, %v53_v41  ;;  %v52_v49 = vld [vmem:[%s758_s1 + $0xf0] sm:$0xff]  ;;  %v55_v50 = vld [vmem:[%s758_s1 + $0x108] sm:$0xff]  ;;  %v62_v52 = vld [vmem:[%s758_s1 + $0x140] sm:$0xff]  ;;  %v449_v53 = vpack.c.bf16 %v51_v46, %v48_v45 }
   0xd   :  { %412 = vmatpush1.bf16.msra.mxu0 %v411_v25  ;;  %440 = vmatpush3.bf16.msra.mxu1 %v437_v27  ;;  %v59_v51 = vld [vmem:[%s758_s1 + $0x128] sm:$0xff]  ;;  %v54_v54 = vld [vmem:[%s758_s1 + $0x100] sm:$0xff]  ;;  %v57_v55 = vld [vmem:[%s758_s1 + $0x118] sm:$0xff]  ;;  %v423_v56 = vpack.c.bf16 %v55_v50, %v52_v49  ;;  %v82_v25 = vsub.s32 2, %v73_v19 }
   0xe   :  { %414 = vmatprep.subr.bf16.mxu0 %v413_v28  ;;  %442 = vmatprep.subr.bf16.mxu1 %v441_v34  ;;  %v425_v57 = vpack.c.bf16 %v62_v52, %v59_v51  ;;  %v58_v58 = vld [vmem:[%s758_s1 + $0x120] sm:$0xff]  ;;  %v61_v59 = vld [vmem:[%s758_s1 + $0x138] sm:$0xff]  ;;  %v68_v61 = vld [vmem:[%s758_s1 + $0x170] sm:$0xff]  ;;  %v453_v62 = vpack.c.bf16 %v57_v55, %v54_v54 }
   0xf   :  { %v65_v60 = vld [vmem:[%s758_s1 + $0x158] sm:$0xff]  ;;  %v60_v63 = vld [vmem:[%s758_s1 + $0x130] sm:$0xff]  ;;  %v63_v0 = vld [vmem:[%s758_s1 + $0x148] sm:$0xff]  ;;  %v427_v1 = vpack.c.bf16 %v61_v59, %v58_v58 }
  0x10   :  { %v429_v2 = vpack.c.bf16 %v68_v61, %v65_v60  ;;  %v64_v4 = vld [vmem:[%s758_s1 + $0x150] sm:$0xff]  ;;  %v67_v5 = vld [vmem:[%s758_s1 + $0x168] sm:$0xff]  ;;  %v457_v6 = vpack.c.bf16 %v63_v0, %v60_v63  ;;  %v66_v7 = vld [vmem:[%s758_s1 + $0x160] sm:$0xff] }
  0x11   :  { %416 = vmatpush1.bf16.msra.mxu0 %v415_v37  ;;  %444 = vmatpush3.bf16.msra.mxu1 %v441_v34  ;;  %v69_v8 = vld [vmem:[%s758_s1 + $0x178] sm:$0xff]  ;;  %v431_v9 = vpack.c.bf16 %v67_v5, %v64_v4  ;;  %v15_v11 = vld [vmem:[%s759_s0 + $0x8] sm:$0xff]  ;;  %v16_v12 = vld [vmem:[%s759_s0 + $0x10] sm:$0xff] }
  0x12   :  { %418 = vmatprep.subr.bf16.mxu0 %v417_v38  ;;  %446 = vmatprep.subr.bf16.mxu1 %v445_v43  ;;  %v461_v10 = vpack.c.bf16 %v69_v8, %v66_v7  ;;  %v17_v13 = vld [vmem:[%s759_s0 + $0x18] sm:$0xff]  ;;  %v18_v14 = vld [vmem:[%s759_s0 + $0x20] sm:$0xff]  ;;  %v19_v15 = vld [vmem:[%s759_s0 + $0x28] sm:$0xff] }
  0x13   :  { %v20_v16 = vld [vmem:[%s759_s0 + $0x30] sm:$0xff]  ;;  %v21_v17 = vld [vmem:[%s759_s0 + $0x38] sm:$0xff]  ;;  %v70_v21 = vld [vmem:[%s760_s2] sm:$0x7] }
  0x14   :  { %v666_v23 = vrot.slane %v70_v21, %v74_v20  ;;  %v668_v24 = vrot.slane %v70_v21, %v78_v22  ;;  %v83_v29 = vrot.slane %v70_v21, %v82_v25 }
  0x15   :  { %420 = vmatpush1.bf16.msra.mxu0 %v419_v47  ;;  %448 = vmatpush3.bf16.msra.mxu1 %v445_v43 }
  0x16   :  { %422 = vmatprep.subr.bf16.mxu0 %v421_v48  ;;  %450 = vmatprep.subr.bf16.mxu1 %v449_v53 }
  0x19   :  { %424 = vmatpush1.bf16.msra.mxu0 %v423_v56  ;;  %452 = vmatpush3.bf16.msra.mxu1 %v449_v53 }
  0x1a   :  { %426 = vmatprep.subr.bf16.mxu0 %v425_v57  ;;  %454 = vmatprep.subr.bf16.mxu1 %v453_v62 }
  0x1d   :  { %428 = vmatpush1.bf16.msra.mxu0 %v427_v1  ;;  %456 = vmatpush3.bf16.msra.mxu1 %v453_v62 }
  0x1e   :  { %430 = vmatprep.subr.bf16.mxu0 %v429_v2  ;;  %458 = vmatprep.subr.bf16.mxu1 %v457_v6 }
  0x21   :  { %432 = vmatpush1.bf16.msra.mxu0 %v431_v9  ;;  %460 = vmatpush3.bf16.msra.mxu1 %v457_v6 }
  0x22   :  { %462 = vmatprep.subr.bf16.mxu1 %v461_v10 }
  0x24   :  { %152 = vmatmul.mubr.f32.vlgmr.msra.gmra.mrb[0].mxu0 %v14_v44 }
  0x25   :  { %157 = vmatprep.mubr.f32.mxu0 %v466_v3  ;;  %464 = vmatpush3.bf16.msra.mxu1 %v461_v10 }
  0x28   :  { %158 = vmatmul.mubr.f32.gmra.mrb[2].mxu0 %v15_v11  ;;  %390 = vmatmul.mubr.f32.vlgmr.msra.gmra.mrb[0].mxu1 %v15_v11 }
  0x29   :  { %163 = vmatprep.mubr.f32.mxu0 %v466_v3  ;;  %392 = vmatprep.mubr.f32.mxu1 %v16_v12 }
  0x2c   :  { %164 = vmatmul.mubr.f32.gmra.mrb[4].mxu0 %v16_v12  ;;  %393 = vmatmul.mubr.f32.gmra.mrb[2].mxu1 %v17_v13 }
  0x2d   :  { %169 = vmatprep.mubr.f32.mxu0 %v466_v3  ;;  %395 = vmatprep.mubr.f32.mxu1 %v18_v14 }
  0x30   :  { %170 = vmatmul.mubr.f32.gmra.mrb[6].mxu0 %v17_v13  ;;  %396 = vmatmul.mubr.f32.gmra.mrb[4].mxu1 %v19_v15 }
  0x31   :  { %175 = vmatprep.mubr.f32.mxu0 %v466_v3  ;;  %398 = vmatprep.mubr.f32.mxu1 %v20_v16 }
  0x34   :  { %176 = vmatmul.mubr.f32.gmra.mrb[8].mxu0 %v18_v14  ;;  %399 = vmatmul.mubr.f32.gmra.mrb[6].mxu1 %v21_v17 }
  0x35   :  { %181 = vmatprep.mubr.f32.mxu0 %v466_v3 }
  0x38   :  { %182 = vmatmul.mubr.f32.gmra.mrb[10].mxu0 %v19_v15 }
  0x39   :  { %187 = vmatprep.mubr.f32.mxu0 %v466_v3 }
  0x3c   :  { %188 = vmatmul.mubr.f32.gmra.mrb[12].mxu0 %v20_v16 }
  0x3d   :  { %193 = vmatprep.mubr.f32.mxu0 %v466_v3 }
  0x40   :  { %194 = vmatmul.mubr.f32.gmra.mrb[14].mxu0 %v21_v17 }
  0xf7   :  { %v153_v26 = vpop.f32.mrb[0].mxu0 }
  0xf8   :  { %v154_v27 = vadd.f32 %v153_v26, %v666_v23  ;;  %v155_v28 = vpop.f32.mrb[1].mxu0 }
  0xf9   :  { %v156_v3 = vadd.f32 %v155_v28, %v668_v24 }
  0xfa   :  { %305 = vst [vmem:[%s761_s3] sm:$0xff] %v154_v27 }
  0xfb   :  { %306 = vst [vmem:[%s761_s3 + $0x8] sm:$0xff] %v156_v3  ;;  %v159_v30 = vpop.f32.mrb[2].mxu0  ;;  %v391_v33 = vpop.f32.mrb[0].mxu1 }
  0xfc   :  { %v160_v31 = vadd.f32 %v159_v30, %v666_v23  ;;  %v161_v32 = vpop.f32.mrb[3].mxu0  ;;  %v272_v35 = vadd.f32 %v391_v33, %v83_v29  ;;  %v266_v36 = vpop.f32.mrb[1].mxu1 }
  0xfd   :  { %v162_v34 = vadd.f32 %v161_v32, %v668_v24  ;;  %v267_v37 = vadd.f32 %v266_v36, %v83_v29 }
  0xfe   :  { %308 = vst [vmem:[%s761_s3 + $0x18] sm:$0xff] %v160_v31  ;;  %310 = vst [vmem:[%s761_s3 + $0x28] sm:$0xff] %v272_v35 }
  0xff   :  { %309 = vst [vmem:[%s761_s3 + $0x20] sm:$0xff] %v162_v34  ;;  %v165_v38 = vpop.f32.mrb[4].mxu0  ;;  %307 = vst [vmem:[%s761_s3 + $0x10] sm:$0xff] %v267_v37  ;;  %v394_v41 = vpop.f32.mrb[2].mxu1 }
 0x100   :  { %v166_v39 = vadd.f32 %v165_v38, %v666_v23  ;;  %v167_v40 = vpop.f32.mrb[5].mxu0  ;;  %v282_v43 = vadd.f32 %v394_v41, %v83_v29  ;;  %v276_v44 = vpop.f32.mrb[3].mxu1 }
 0x101   :  { %v168_v42 = vadd.f32 %v167_v40, %v668_v24  ;;  %v277_v45 = vadd.f32 %v276_v44, %v83_v29 }
 0x102   :  { %311 = vst [vmem:[%s761_s3 + $0x30] sm:$0xff] %v166_v39  ;;  %316 = vst [vmem:[%s761_s3 + $0x58] sm:$0xff] %v282_v43 }
 0x103   :  { %312 = vst [vmem:[%s761_s3 + $0x38] sm:$0xff] %v168_v42  ;;  %v171_v46 = vpop.f32.mrb[6].mxu0  ;;  %313 = vst [vmem:[%s761_s3 + $0x40] sm:$0xff] %v277_v45  ;;  %v397_v49 = vpop.f32.mrb[4].mxu1 }
 0x104   :  { %v172_v47 = vadd.f32 %v171_v46, %v666_v23  ;;  %v173_v48 = vpop.f32.mrb[7].mxu0  ;;  %v292_v51 = vadd.f32 %v397_v49, %v83_v29  ;;  %v286_v52 = vpop.f32.mrb[5].mxu1 }
 0x105   :  { %v174_v50 = vadd.f32 %v173_v48, %v668_v24  ;;  %v287_v53 = vadd.f32 %v286_v52, %v83_v29 }
 0x106   :  { %314 = vst [vmem:[%s761_s3 + $0x48] sm:$0xff] %v172_v47  ;;  %322 = vst [vmem:[%s761_s3 + $0x88] sm:$0xff] %v292_v51 }
 0x107   :  { %315 = vst [vmem:[%s761_s3 + $0x50] sm:$0xff] %v174_v50  ;;  %v177_v54 = vpop.f32.mrb[8].mxu0  ;;  %319 = vst [vmem:[%s761_s3 + $0x70] sm:$0xff] %v287_v53  ;;  %v400_v57 = vpop.f32.mrb[6].mxu1 }
 0x108   :  { %v178_v55 = vadd.f32 %v177_v54, %v666_v23  ;;  %v179_v56 = vpop.f32.mrb[9].mxu0  ;;  %v302_v59 = vadd.f32 %v400_v57, %v83_v29  ;;  %v296_v60 = vpop.f32.mrb[7].mxu1 }
 0x109   :  { %v180_v58 = vadd.f32 %v179_v56, %v668_v24  ;;  %v297_v61 = vadd.f32 %v296_v60, %v83_v29 }
 0x10a   :  { %317 = vst [vmem:[%s761_s3 + $0x60] sm:$0xff] %v178_v55  ;;  %328 = vst [vmem:[%s761_s3 + $0xb8] sm:$0xff] %v302_v59 }
 0x10b   :  { %318 = vst [vmem:[%s761_s3 + $0x68] sm:$0xff] %v180_v58  ;;  %v183_v62 = vpop.f32.mrb[10].mxu0  ;;  %325 = vst [vmem:[%s761_s3 + $0xa0] sm:$0xff] %v297_v61 }
 0x10c   :  { %v184_v63 = vadd.f32 %v183_v62, %v666_v23  ;;  %v185_v0 = vpop.f32.mrb[11].mxu0 }
 0x10d   :  { %v186_v1 = vadd.f32 %v185_v0, %v668_v24 }
 0x10e   :  { %320 = vst [vmem:[%s761_s3 + $0x78] sm:$0xff] %v184_v63 }
 0x10f   :  { %321 = vst [vmem:[%s761_s3 + $0x80] sm:$0xff] %v186_v1  ;;  %v189_v2 = vpop.f32.mrb[12].mxu0 }
 0x110   :  { %v190_v4 = vadd.f32 %v189_v2, %v666_v23  ;;  %v191_v5 = vpop.f32.mrb[13].mxu0 }
 0x111   :  { %v192_v6 = vadd.f32 %v191_v5, %v668_v24 }
 0x112   :  { %323 = vst [vmem:[%s761_s3 + $0x90] sm:$0xff] %v190_v4 }
 0x113   :  { %324 = vst [vmem:[%s761_s3 + $0x98] sm:$0xff] %v192_v6  ;;  %v195_v7 = vpop.f32.mrb[14].mxu0 }
 0x114   :  { %v196_v8 = vadd.f32 %v195_v7, %v666_v23  ;;  %v197_v9 = vpop.f32.mrb[15].mxu0 }
 0x115   :  { %v198_v10 = vadd.f32 %v197_v9, %v668_v24 }
 0x116   :  { %326 = vst [vmem:[%s761_s3 + $0xa8] sm:$0xff] %v196_v8 }
 0x117   :  { %327 = vst [vmem:[%s761_s3 + $0xb0] sm:$0xff] %v198_v10 }

</bundles_post_ra>
